<compile_context>
chip_gen: v7x
topology: tpu7x:2x2x1
jax: 0.10.0
libtpu: 0.0.40
codegen_flags: <defaults>
</compile_context>

<pallas_src>
import jax
import jax.numpy as jnp
from jax import lax
from jax.experimental import pallas as pl
from jax.experimental.pallas import tpu as pltpu

# ----- problem sizes (small, consistent with the module) -----
N_CLASS = 16   # vocabulary size / output classes
EMB     = 32   # embedding_dim
HIDDEN  = 32   # n_hidden
BATCH   = 2
SEQ     = 8

BATCH_PAD = 8    # full sublane group
OUT_PAD   = 128  # lane-dense output width (unmasked vst)


def textrnn_kernel(xi_ref,    # (SEQ*BATCH_PAD, 1) int32   time-major token ids, batch padded
                   proj_ref,  # (N_CLASS, HIDDEN)  f32     emb @ W_ih^T + (b_ih + b_hh)
                   whh_ref,   # (HIDDEN, HIDDEN)   bf16    W_hh^T
                   wout_ref,  # (HIDDEN, OUT_PAD)  bf16    W^T, zero-padded to 128 lanes
                   bout_ref,  # (1, OUT_PAD)       f32     b,   zero-padded to 128 lanes
                   out_ref):  # (BATCH_PAD, OUT_PAD) f32
    # --- Embedding gather + input projection as ONE MXU matmul (one-hot @ table).
    #     Independent of the recurrence -> scheduled off the serial chain.
    classes = lax.broadcasted_iota(jnp.int32, (SEQ * BATCH_PAD, N_CLASS), 1)
    onehot = jnp.where(xi_ref[...] == classes, 1.0, 0.0).astype(jnp.float32)
    xp = jnp.dot(onehot, proj_ref[...],
                 preferred_element_type=jnp.float32)           # (SEQ*8, HIDDEN) f32

    whh = whh_ref[...]                                         # hoist: load W_hh^T once (bf16)

    # --- Peeled first step: h0 == 0 so step 0 is just tanh(xp_0).
    h = jnp.tanh(xp[0:BATCH_PAD, :])                           # (8, HIDDEN) f32

    # --- Remaining steps, fully unrolled at trace time (static slices of xp);
    #     only the bf16 recurrent matmul + f32 add + tanh sit on the chain.
    for t in range(1, SEQ):
        xp_t = xp[t * BATCH_PAD:(t + 1) * BATCH_PAD, :]
        h = jnp.tanh(xp_t + jnp.dot(h.astype(jnp.bfloat16), whh,
                                    preferred_element_type=jnp.float32))

    # --- model = h_T @ W^T + b   (lane-dense 128-wide, single unmasked store)
    out_ref[...] = (jnp.dot(h.astype(jnp.bfloat16), wout_ref[...],
                            preferred_element_type=jnp.float32)
                    + bout_ref[...])


def prepare_params(params):
    """One-time parameter preparation (off the per-call path)."""
    emb_table, w_ih, w_hh, b_ih, b_hh, w_out, b_out = params
    # Fold the input projection and BOTH RNN biases into the embedding table.
    proj_table = (emb_table.astype(jnp.float32) @ w_ih.T.astype(jnp.float32)
                  + (b_ih + b_hh).astype(jnp.float32))                 # (N_CLASS, HIDDEN)
    whh_t = w_hh.T.astype(jnp.bfloat16)                                # (HIDDEN, HIDDEN)
    wout_pad = jnp.zeros((HIDDEN, OUT_PAD), jnp.bfloat16).at[:, :N_CLASS].set(
        w_out.T.astype(jnp.bfloat16))
    bout_pad = jnp.zeros((1, OUT_PAD), jnp.float32).at[:, :N_CLASS].set(
        b_out.astype(jnp.float32))
    return proj_table, whh_t, wout_pad, bout_pad


@jax.jit
def textrnn_forward(X, prepared):
    """X: int32 indices of shape (BATCH, SEQ). Returns (BATCH, N_CLASS) float32."""
    proj_table, whh_t, wout_pad, bout_pad = prepared
    B, S = X.shape

    # Time-major, batch padded to a full sublane group, flattened to (S*8, 1).
    # Padded rows gather class 0 -> finite garbage, row-independent, sliced off.
    xi = jnp.zeros((SEQ, BATCH_PAD), jnp.int32).at[:, :B].set(X.T)
    xi = xi.reshape(SEQ * BATCH_PAD, 1)

    vmem = pl.BlockSpec(memory_space=pltpu.MemorySpace.VMEM)
    out = pl.pallas_call(
        textrnn_kernel,
        out_shape=jax.ShapeDtypeStruct((BATCH_PAD, OUT_PAD), jnp.float32),
        in_specs=[vmem] * 5,
        out_specs=vmem,
    )(xi, proj_table, whh_t, wout_pad, bout_pad)

    return out[:B, :N_CLASS]


def init_params(key):
    ks = jax.random.split(key, 6)
    scale = 0.1
    emb_table = scale * jax.random.normal(ks[0], (N_CLASS, EMB), jnp.float32)
    w_ih = scale * jax.random.normal(ks[1], (HIDDEN, EMB), jnp.float32)
    w_hh = scale * jax.random.normal(ks[2], (HIDDEN, HIDDEN), jnp.float32)
    b_ih = scale * jax.random.normal(ks[3], (HIDDEN,), jnp.float32)
    b_hh = scale * jax.random.normal(ks[4], (HIDDEN,), jnp.float32)
    w_out = scale * jax.random.normal(ks[5], (N_CLASS, HIDDEN), jnp.float32)
    b_out = jnp.ones((N_CLASS,), jnp.float32)     # nn.Parameter(torch.ones([n_class]))
    return emb_table, w_ih, w_hh, b_ih, b_hh, w_out, b_out


def textrnn_reference(X, params):
    """Pure-JAX f32 reference matching PyTorch semantics, for verification."""
    emb_table, w_ih, w_hh, b_ih, b_hh, w_out, b_out = params
    x = jnp.take(emb_table, X, axis=0)            # (B, S, E)
    x = jnp.transpose(x, (1, 0, 2))               # (S, B, E)
    h = jnp.zeros((X.shape[0], HIDDEN), jnp.float32)
    for t in range(x.shape[0]):
        h = jnp.tanh(x[t] @ w_ih.T + b_ih + h @ w_hh.T + b_hh)
    return h @ w_out.T + b_out


if __name__ == "__main__":
    key = jax.random.PRNGKey(0)
    k_params, k_x = jax.random.split(key)
    params = init_params(k_params)
    prepared = prepare_params(params)
    X = jax.random.randint(k_x, (BATCH, SEQ), 0, N_CLASS, dtype=jnp.int32)

    out = textrnn_forward(X, prepared)
    out = jax.block_until_ready(out)

    ref = textrnn_reference(X, params)
    assert out.shape == (BATCH, N_CLASS)
    # Kernel matmuls use bf16 operands (single-pass MXU) with f32 accumulation;
    # at these magnitudes the deviation from the f32 reference is a few 1e-3.
    assert jnp.allclose(out, ref, atol=2e-2, rtol=2e-2), "mismatch vs reference"

    print("KERNEL_OK")
</pallas_src>

<mosaic_0001>
module attributes {stable_mosaic.version = 11 : i64} {
  func.func @textrnn_kernel(%arg0: memref<64x1xi32, #tpu.memory_space<vmem>>, %arg1: memref<16x32xf32, #tpu.memory_space<vmem>>, %arg2: memref<32x32xbf16, #tpu.memory_space<vmem>>, %arg3: memref<32x128xbf16, #tpu.memory_space<vmem>>, %arg4: memref<1x128xf32, #tpu.memory_space<vmem>>, %arg5: memref<8x128xf32, #tpu.memory_space<vmem>>) attributes {dimension_semantics = [], scalar_prefetch = 0 : i64, scratch_operands = 0 : i64, tpu.core_type = #tpu.core_type<tc>} {
    %0 = tpu.iota {dimensions = array<i32: 1>} : vector<64x16xi32>
    %c0 = arith.constant 0 : index
    %c0_0 = arith.constant 0 : index
    %1 = vector.load %arg0[%c0, %c0_0] : memref<64x1xi32, #tpu.memory_space<vmem>>, vector<64x1xi32>
    %2 = vector.broadcast %1 : vector<64x1xi32> to vector<64x16xi32>
    %3 = arith.cmpi eq, %2, %0 : vector<64x16xi32>
    %cst = arith.constant 1.000000e+00 : f32
    %cst_1 = arith.constant 0.000000e+00 : f32
    %4 = vector.broadcast %cst : f32 to vector<64x16xf32>
    %5 = vector.broadcast %cst_1 : f32 to vector<64x16xf32>
    %6 = arith.select %3, %4, %5 : vector<64x16xi1>, vector<64x16xf32>
    %c0_2 = arith.constant 0 : index
    %c0_3 = arith.constant 0 : index
    %7 = vector.load %arg1[%c0_2, %c0_3] : memref<16x32xf32, #tpu.memory_space<vmem>>, vector<16x32xf32>
    %cst_4 = arith.constant dense<0.000000e+00> : vector<64x32xf32>
    %8 = tpu.matmul %6, %7, %cst_4 {dimension_numbers = #tpu.dot_dimension_numbers<[1], [0], [0], [1], [0, 0, 1, 1], [], []>} : vector<64x16xf32>, vector<16x32xf32>, vector<64x32xf32> -> vector<64x32xf32>
    %c0_5 = arith.constant 0 : index
    %c0_6 = arith.constant 0 : index
    %9 = vector.load %arg2[%c0_5, %c0_6] : memref<32x32xbf16, #tpu.memory_space<vmem>>, vector<32x32xbf16>
    %10 = vector.extract_strided_slice %8 {offsets = [0, 0], sizes = [8, 32], strides = [1, 1]} : vector<64x32xf32> to vector<8x32xf32>
    %11 = math.tanh %10 : vector<8x32xf32>
    %12 = vector.extract_strided_slice %8 {offsets = [8, 0], sizes = [8, 32], strides = [1, 1]} : vector<64x32xf32> to vector<8x32xf32>
    %13 = arith.truncf %11 : vector<8x32xf32> to vector<8x32xbf16>
    %cst_7 = arith.constant dense<0.000000e+00> : vector<8x32xf32>
    %14 = tpu.matmul %13, %9, %cst_7 {dimension_numbers = #tpu.dot_dimension_numbers<[1], [0], [0], [1], [0, 0, 1, 1], [], []>} : vector<8x32xbf16>, vector<32x32xbf16>, vector<8x32xf32> -> vector<8x32xf32>
    %15 = arith.addf %12, %14 : vector<8x32xf32>
    %16 = math.tanh %15 : vector<8x32xf32>
    %17 = vector.extract_strided_slice %8 {offsets = [16, 0], sizes = [8, 32], strides = [1, 1]} : vector<64x32xf32> to vector<8x32xf32>
    %18 = arith.truncf %16 : vector<8x32xf32> to vector<8x32xbf16>
    %cst_8 = arith.constant dense<0.000000e+00> : vector<8x32xf32>
    %19 = tpu.matmul %18, %9, %cst_8 {dimension_numbers = #tpu.dot_dimension_numbers<[1], [0], [0], [1], [0, 0, 1, 1], [], []>} : vector<8x32xbf16>, vector<32x32xbf16>, vector<8x32xf32> -> vector<8x32xf32>
    %20 = arith.addf %17, %19 : vector<8x32xf32>
    %21 = math.tanh %20 : vector<8x32xf32>
    %22 = vector.extract_strided_slice %8 {offsets = [24, 0], sizes = [8, 32], strides = [1, 1]} : vector<64x32xf32> to vector<8x32xf32>
    %23 = arith.truncf %21 : vector<8x32xf32> to vector<8x32xbf16>
    %cst_9 = arith.constant dense<0.000000e+00> : vector<8x32xf32>
    %24 = tpu.matmul %23, %9, %cst_9 {dimension_numbers = #tpu.dot_dimension_numbers<[1], [0], [0], [1], [0, 0, 1, 1], [], []>} : vector<8x32xbf16>, vector<32x32xbf16>, vector<8x32xf32> -> vector<8x32xf32>
    %25 = arith.addf %22, %24 : vector<8x32xf32>
    %26 = math.tanh %25 : vector<8x32xf32>
    %27 = vector.extract_strided_slice %8 {offsets = [32, 0], sizes = [8, 32], strides = [1, 1]} : vector<64x32xf32> to vector<8x32xf32>
    %28 = arith.truncf %26 : vector<8x32xf32> to vector<8x32xbf16>
    %cst_10 = arith.constant dense<0.000000e+00> : vector<8x32xf32>
    %29 = tpu.matmul %28, %9, %cst_10 {dimension_numbers = #tpu.dot_dimension_numbers<[1], [0], [0], [1], [0, 0, 1, 1], [], []>} : vector<8x32xbf16>, vector<32x32xbf16>, vector<8x32xf32> -> vector<8x32xf32>
    %30 = arith.addf %27, %29 : vector<8x32xf32>
    %31 = math.tanh %30 : vector<8x32xf32>
    %32 = vector.extract_strided_slice %8 {offsets = [40, 0], sizes = [8, 32], strides = [1, 1]} : vector<64x32xf32> to vector<8x32xf32>
    %33 = arith.truncf %31 : vector<8x32xf32> to vector<8x32xbf16>
    %cst_11 = arith.constant dense<0.000000e+00> : vector<8x32xf32>
    %34 = tpu.matmul %33, %9, %cst_11 {dimension_numbers = #tpu.dot_dimension_numbers<[1], [0], [0], [1], [0, 0, 1, 1], [], []>} : vector<8x32xbf16>, vector<32x32xbf16>, vector<8x32xf32> -> vector<8x32xf32>
    %35 = arith.addf %32, %34 : vector<8x32xf32>
    %36 = math.tanh %35 : vector<8x32xf32>
    %37 = vector.extract_strided_slice %8 {offsets = [48, 0], sizes = [8, 32], strides = [1, 1]} : vector<64x32xf32> to vector<8x32xf32>
    %38 = arith.truncf %36 : vector<8x32xf32> to vector<8x32xbf16>
    %cst_12 = arith.constant dense<0.000000e+00> : vector<8x32xf32>
    %39 = tpu.matmul %38, %9, %cst_12 {dimension_numbers = #tpu.dot_dimension_numbers<[1], [0], [0], [1], [0, 0, 1, 1], [], []>} : vector<8x32xbf16>, vector<32x32xbf16>, vector<8x32xf32> -> vector<8x32xf32>
    %40 = arith.addf %37, %39 : vector<8x32xf32>
    %41 = math.tanh %40 : vector<8x32xf32>
    %42 = vector.extract_strided_slice %8 {offsets = [56, 0], sizes = [8, 32], strides = [1, 1]} : vector<64x32xf32> to vector<8x32xf32>
    %43 = arith.truncf %41 : vector<8x32xf32> to vector<8x32xbf16>
    %cst_13 = arith.constant dense<0.000000e+00> : vector<8x32xf32>
    %44 = tpu.matmul %43, %9, %cst_13 {dimension_numbers = #tpu.dot_dimension_numbers<[1], [0], [0], [1], [0, 0, 1, 1], [], []>} : vector<8x32xbf16>, vector<32x32xbf16>, vector<8x32xf32> -> vector<8x32xf32>
    %45 = arith.addf %42, %44 : vector<8x32xf32>
    %46 = math.tanh %45 : vector<8x32xf32>
    %47 = arith.truncf %46 : vector<8x32xf32> to vector<8x32xbf16>
    %c0_14 = arith.constant 0 : index
    %c0_15 = arith.constant 0 : index
    %48 = vector.load %arg3[%c0_14, %c0_15] : memref<32x128xbf16, #tpu.memory_space<vmem>>, vector<32x128xbf16>
    %cst_16 = arith.constant dense<0.000000e+00> : vector<8x128xf32>
    %49 = tpu.matmul %47, %48, %cst_16 {dimension_numbers = #tpu.dot_dimension_numbers<[1], [0], [0], [1], [0, 0, 1, 1], [], []>} : vector<8x32xbf16>, vector<32x128xbf16>, vector<8x128xf32> -> vector<8x128xf32>
    %c0_17 = arith.constant 0 : index
    %c0_18 = arith.constant 0 : index
    %50 = vector.load %arg4[%c0_17, %c0_18] : memref<1x128xf32, #tpu.memory_space<vmem>>, vector<1x128xf32>
    %51 = vector.broadcast %50 : vector<1x128xf32> to vector<8x128xf32>
    %52 = arith.addf %49, %51 : vector<8x128xf32>
    %c0_19 = arith.constant 0 : index
    %c0_20 = arith.constant 0 : index
    %53 = vector.load %arg5[%c0_19, %c0_20] : memref<8x128xf32, #tpu.memory_space<vmem>>, vector<8x128xf32>
    tpu.vector_store %arg5[%c0_19, %c0_20], %52 {strides = array<i32>} : memref<8x128xf32, #tpu.memory_space<vmem>>, vector<8x128xf32>,
    return
  }
}

</mosaic_0001>

<bundles_post_ra>
// kernel: textrnn_forward.1
= control target key start
LH: loop header
LB: loop body
LE: loop exit
PB: predicated region body
PF: predicated region fallthrough
CT: control target
= control target key end

     0   :  { %v779_v0 = vmov 0   ;;  %v780_v7 = vmov 0.0   ;;  %v21_v12 = vlaneseq  ;;  %vm73_vm0 = vcmask 130048   ;;  %s937_s0 = inlined_call_operand.vmem [shape: s32[64,1], index: 0, kind: input, shape index: {}]   ;;  %s938_s1 = inlined_call_operand.vmem [shape: f32[16,32], index: 1, kind: input, shape index: {}]   ;;  %s939_s2 = inlined_call_operand.vmem [shape: bf16[32,32], index: 2, kind: input, shape index: {}]   ;;  %s940_s3 = inlined_call_operand.vmem [shape: bf16[32,128], index: 3, kind: input, shape index: {}]   ;;  %s941_s4 = inlined_call_operand.vmem [shape: f32[1,128], index: 4, kind: input, shape index: {}]   ;;  %s942_s5 = inlined_call_operand.vmem [shape: f32[8,128], index: 5, kind: output, shape index: {}]  }
   0x1   :  { %757 = vset.pattern.permute.xlu0 %v779_v0  ;;  %v23_v1 = vld [vmem:[%s937_s0] sm:$0xff]  ;;  %758 = vset.pattern.permute.xlu1 %v779_v0  ;;  %v25_v2 = vld [vmem:[%s937_s0 + $0x10] sm:$0xff]  ;;  %v24_v3 = vld [vmem:[%s937_s0 + $0x8] sm:$0xff]  ;;  %vm781_vm8 = vmmov 0   ;;  %vm221_vm9 = vcmask 261120  }
   0x2   :  { %32 = vperm.xlu0 %757, %v23_v1   ;;  %38 = vperm.xlu1 %758, %v25_v2   ;;  %v26_v4 = vld [vmem:[%s937_s0 + $0x18] sm:$0xff]  ;;  %v71_v5 = vld [vmem:[%s938_s1] sm:$0xff]  ;;  %v72_v6 = vld [vmem:[%s938_s1 + $0x8] sm:$0xff]  ;;  %v22_v13 = vand.u32 127, %v21_v12 }
   0x3   :  { %686 = vmatprep.subr.bf16.mxu1 %v780_v7  ;;  %v750_v8 = vpack.c.bf16 %v72_v6, %v71_v5  ;;  %v27_v9 = vld [vmem:[%s937_s0 + $0x20] sm:$0xff]  ;;  %v28_v10 = vld [vmem:[%s937_s0 + $0x28] sm:$0xff]  ;;  %v29_v11 = vld [vmem:[%s937_s0 + $0x30] sm:$0xff]  ;;  %690 = vmatprep.mubr.msk.bf16.mxu1 %vm781_vm8, %v780_v7 }
   0x4   :  { %v858_v28 = vld [vmem:[%s939_s2] sm:$0xff]   ;;  %v867_v29 = vld [vmem:[%s939_s2 + $0x8] sm:$0xff]   ;;  %v30_v30 = vld [vmem:[%s937_s0 + $0x38] sm:$0xff] }
   0x5   :  { %751 = vmatprep.subr.bf16.mxu0 %v750_v8  ;;  %687 = vmatpush3.bf16.msra.mxu1 %v858_v28 }
   0x6   :  { %35 = vperm.xlu0 %757, %v24_v3   ;;  %41 = vperm.xlu1 %758, %v26_v4  }
   0x7   :  { %753 = vmatpush3.bf16.msra.mxu0 %v750_v8  ;;  %688 = vmatprep.subr.bf16.mxu1 %v780_v7 }
   0x8   :  { %702 = vmatprep.subr.bf16.mxu0 %v780_v7 }
   0x9   :  { %689 = vmatpush3.bf16.msra.mxu1 %v867_v29 }
   0xa   :  { %44 = vperm.xlu0 %757, %v27_v9   ;;  %47 = vperm.xlu1 %758, %v28_v10  }
   0xb   :  { %694 = vmatprep.subr.bf16.mxu1 %v780_v7 }
   0xe   :  { %50 = vperm.xlu0 %757, %v29_v11   ;;  %53 = vperm.xlu1 %758, %v30_v30  }
  0x81   :  { %v33_v14 = vpop.permute.xlu0 %32  ;;  %v39_v15 = vpop.permute.xlu1 %38 }
  0x82   :  { %vm55_vm1 = vcmp.eq.s32.totalorder %v33_v14, %v22_v13  ;;  %vm57_vm2 = vcmp.eq.s32.totalorder %v39_v15, %v22_v13 }
  0x83   :  { %v63_v16 = vsel %vm55_vm1, 1.0, %v780_v7  ;;  %v65_v19 = vsel %vm57_vm2, 1.0, %v780_v7 }
  0x84   :  { %674 = vmatprep.mubr.msk.f32.mxu0 %vm73_vm0, %v63_v16 }
  0x85   :  { %v36_v17 = vpop.permute.xlu0 %35  ;;  %v42_v18 = vpop.permute.xlu1 %41 }
  0x86   :  { %vm56_vm3 = vcmp.eq.s32.totalorder %v36_v17, %v22_v13  ;;  %vm58_vm4 = vcmp.eq.s32.totalorder %v42_v18, %v22_v13 }
  0x87   :  { %v64_v20 = vsel %vm56_vm3, 1.0, %v780_v7  ;;  %v66_v21 = vsel %vm58_vm4, 1.0, %v780_v7 }
  0x88   :  { %675 = vmatmul.mubr.msk.f32.vlgmr.msra.gmra.mrb[0].mxu0 %vm73_vm0, %v64_v20 }
  0x89   :  { %v45_v22 = vpop.permute.xlu0 %44  ;;  %677 = vmatprep.mubr.msk.f32.mxu0 %vm73_vm0, %v65_v19  ;;  %v48_v23 = vpop.permute.xlu1 %47  ;;  %703 = vmatpush3.bf16.msra.mxu0 %v858_v28 }
  0x8a   :  { %vm59_vm5 = vcmp.eq.s32.totalorder %v45_v22, %v22_v13  ;;  %vm60_vm6 = vcmp.eq.s32.totalorder %v48_v23, %v22_v13  ;;  %704 = vmatprep.subr.bf16.mxu0 %v780_v7  ;;  %v761_v22 = vld [vmem:[%s940_s3] sm:$0xff]   ;;  %v762_v23 = vld [vmem:[%s940_s3 + $0x8] sm:$0xff]  }
  0x8b   :  { %v67_v24 = vsel %vm59_vm5, 1.0, %v780_v7  ;;  %v68_v25 = vsel %vm60_vm6, 1.0, %v780_v7 }
  0x8c   :  { %678 = vmatmul.mubr.msk.f32.gmra.mrb[2].mxu0 %vm73_vm0, %v66_v21 }
  0x8d   :  { %680 = vmatprep.mubr.msk.f32.mxu0 %vm73_vm0, %v67_v24  ;;  %v51_v26 = vpop.permute.xlu0 %50  ;;  %705 = vmatpush3.bf16.msra.mxu0 %v867_v29  ;;  %v54_v35 = vpop.permute.xlu1 %53 }
  0x8e   :  { %vm61_vm7 = vcmp.eq.s32.totalorder %v51_v26, %v22_v13  ;;  %718 = vmatprep.subr.bf16.mxu0 %v780_v7  ;;  %vm62_vm10 = vcmp.eq.s32.totalorder %v54_v35, %v22_v13 }
  0x8f   :  { %v69_v27 = vsel %vm61_vm7, 1.0, %v780_v7  ;;  %v70_v36 = vsel %vm62_vm10, 1.0, %v780_v7 }
  0x90   :  { %681 = vmatmul.mubr.msk.f32.gmra.mrb[4].mxu0 %vm73_vm0, %v68_v25 }
  0x91   :  { %683 = vmatprep.mubr.msk.f32.mxu0 %vm73_vm0, %v69_v27 }
  0x94   :  { %684 = vmatmul.mubr.msk.f32.gmra.mrb[6].mxu0 %vm73_vm0, %v70_v36 }
  0x95   :  { %706 = vmatprep.mubr.msk.bf16.mxu0 %vm781_vm8, %v780_v7 }
 0x15b   :  { %v676_v31 = vpop.f32.mrb[0].mxu0 }
 0x15c   :  { %v164_v32 = vpop.f32.mrb[1].mxu0 }
 0x15d   :  { %763 = vtanh.f32 %v164_v32 }
 0x15f   :  { %v679_v37 = vpop.f32.mrb[2].mxu0 }
 0x160   :  { %v174_v38 = vpop.f32.mrb[3].mxu0 }
 0x163   :  { %v682_v39 = vpop.f32.mrb[4].mxu0 }
 0x164   :  { %v184_v40 = vpop.f32.mrb[5].mxu0 }
 0x167   :  { %v764_v33 = vpop.eup %763  ;;  %v896_v48 = vpop.f32.mrb[6].mxu0 }
 0x168   :  { %v208_v34 = vpack.c.bf16 %v764_v33, %v764_v33  ;;  %v194_v49 = vpop.f32.mrb[7].mxu0 }
 0x16a   :  { %691 = vmatmul.mubr.msk.bf16.vlgmr.msra.gmra.mrb[0].mxu1 %vm221_vm9, %v208_v34 }
 0x16b   :  { %695 = vmatpush3.bf16.msra.mxu1 %v858_v28  ;;  %698 = vmatprep.mubr.msk.bf16.mxu1 %vm781_vm8, %v780_v7 }
 0x16c   :  { %696 = vmatprep.subr.bf16.mxu1 %v780_v7 }
 0x16f   :  { %697 = vmatpush3.bf16.msra.mxu1 %v867_v29 }
 0x170   :  { %710 = vmatprep.subr.bf16.mxu1 %v780_v7 }
 0x23d   :  { %v259_v41 = vpop.f32.mrb[0].mxu1 }
 0x23e   :  { %v265_v42 = vadd.f32 %v676_v31, %v259_v41  ;;  %v692_v43 = vpop.f32.mrb[1].mxu1 }
 0x23f   :  { %v262_v44 = vpop.f32.mrb[2].mxu1 }
 0x240   :  { %765 = vtanh.f32 %v265_v42  ;;  %v693_v45 = vpop.f32.mrb[3].mxu1 }
 0x24a   :  { %v766_v46 = vpop.eup %765 }
 0x24b   :  { %v267_v47 = vpack.c.bf16 %v766_v46, %v766_v46 }
 0x24d   :  { %699 = vmatmul.mubr.msk.bf16.vlgmr.msra.gmra.mrb[4].mxu1 %vm221_vm9, %v267_v47 }
 0x24e   :  { %711 = vmatpush3.bf16.msra.mxu1 %v858_v28  ;;  %714 = vmatprep.mubr.msk.bf16.mxu1 %vm781_vm8, %v780_v7 }
 0x24f   :  { %712 = vmatprep.subr.bf16.mxu1 %v780_v7 }
 0x252   :  { %713 = vmatpush3.bf16.msra.mxu1 %v867_v29 }
 0x253   :  { %726 = vmatprep.subr.bf16.mxu1 %v780_v7 }
 0x320   :  { %v305_v50 = vpop.f32.mrb[4].mxu1 }
 0x321   :  { %v311_v51 = vadd.f32 %v305_v50, %v174_v38  ;;  %v700_v52 = vpop.f32.mrb[5].mxu1 }
 0x322   :  { %v308_v53 = vpop.f32.mrb[6].mxu1 }
 0x323   :  { %767 = vtanh.f32 %v311_v51  ;;  %v701_v54 = vpop.f32.mrb[7].mxu1 }
 0x32d   :  { %v768_v55 = vpop.eup %767 }
 0x32e   :  { %v313_v56 = vpack.c.bf16 %v768_v55, %v768_v55 }
 0x330   :  { %707 = vmatmul.mubr.msk.bf16.vlgmr.msra.gmra.mrb[8].mxu0 %vm221_vm9, %v313_v56 }
 0x331   :  { %719 = vmatpush3.bf16.msra.mxu0 %v858_v28  ;;  %722 = vmatprep.mubr.msk.bf16.mxu0 %vm781_vm8, %v780_v7 }
 0x332   :  { %720 = vmatprep.subr.bf16.mxu0 %v780_v7 }
 0x335   :  { %721 = vmatpush3.bf16.msra.mxu0 %v867_v29 }
 0x336   :  { %734 = vmatprep.subr.bf16.mxu0 %v780_v7 }
 0x403   :  { %v351_v57 = vpop.f32.mrb[8].mxu0 }
 0x404   :  { %v357_v58 = vadd.f32 %v679_v37, %v351_v57  ;;  %v708_v59 = vpop.f32.mrb[9].mxu0 }
 0x405   :  { %v354_v60 = vpop.f32.mrb[10].mxu0 }
 0x406   :  { %769 = vtanh.f32 %v357_v58  ;;  %v709_v61 = vpop.f32.mrb[11].mxu0 }
 0x410   :  { %v770_v62 = vpop.eup %769 }
 0x411   :  { %v359_v63 = vpack.c.bf16 %v770_v62, %v770_v62 }
 0x413   :  { %715 = vmatmul.mubr.msk.bf16.vlgmr.msra.gmra.mrb[8].mxu1 %vm221_vm9, %v359_v63 }
 0x414   :  { %727 = vmatpush3.bf16.msra.mxu1 %v858_v28  ;;  %730 = vmatprep.mubr.msk.bf16.mxu1 %vm781_vm8, %v780_v7 }
 0x415   :  { %728 = vmatprep.subr.bf16.mxu1 %v780_v7 }
 0x418   :  { %729 = vmatpush3.bf16.msra.mxu1 %v867_v29 }
 0x419   :  { %742 = vmatprep.subr.bf16.mxu1 %v780_v7 }
 0x4e6   :  { %v397_v0 = vpop.f32.mrb[8].mxu1 }
 0x4e7   :  { %v403_v1 = vadd.f32 %v397_v0, %v184_v40  ;;  %v716_v2 = vpop.f32.mrb[9].mxu1 }
 0x4e8   :  { %v400_v3 = vpop.f32.mrb[10].mxu1 }
 0x4e9   :  { %771 = vtanh.f32 %v403_v1  ;;  %v717_v4 = vpop.f32.mrb[11].mxu1 }
 0x4f3   :  { %v772_v5 = vpop.eup %771 }
 0x4f4   :  { %v405_v6 = vpack.c.bf16 %v772_v5, %v772_v5 }
 0x4f6   :  { %723 = vmatmul.mubr.msk.bf16.vlgmr.msra.gmra.mrb[12].mxu0 %vm221_vm9, %v405_v6 }
 0x4f7   :  { %735 = vmatpush3.bf16.msra.mxu0 %v858_v28  ;;  %738 = vmatprep.mubr.msk.bf16.mxu0 %vm781_vm8, %v780_v7 }
 0x4f8   :  { %736 = vmatprep.subr.bf16.mxu0 %v780_v7 }
 0x4fb   :  { %737 = vmatpush3.bf16.msra.mxu0 %v867_v29 }
 0x5c9   :  { %v443_v8 = vpop.f32.mrb[12].mxu0 }
 0x5ca   :  { %v449_v9 = vadd.f32 %v682_v39, %v443_v8  ;;  %v724_v10 = vpop.f32.mrb[13].mxu0 }
 0x5cb   :  { %v446_v11 = vpop.f32.mrb[14].mxu0 }
 0x5cc   :  { %773 = vtanh.f32 %v449_v9  ;;  %v725_v12 = vpop.f32.mrb[15].mxu0 }
 0x5d6   :  { %v774_v13 = vpop.eup %773 }
 0x5d7   :  { %v451_v14 = vpack.c.bf16 %v774_v13, %v774_v13 }
 0x5d9   :  { %731 = vmatmul.mubr.msk.bf16.vlgmr.msra.gmra.mrb[12].mxu1 %vm221_vm9, %v451_v14 }
 0x5da   :  { %746 = vmatprep.mubr.msk.bf16.mxu1 %vm781_vm8, %v780_v7  ;;  %743 = vmatpush3.bf16.msra.mxu1 %v761_v22 }
 0x5db   :  { %744 = vmatprep.subr.bf16.mxu1 %v780_v7  ;;  %v632_v7 = vld [vmem:[%s941_s4] ss:$0 sm:$0xff] }
 0x5de   :  { %745 = vmatpush3.bf16.msra.mxu1 %v762_v23 }
 0x6ac   :  { %v489_v15 = vpop.f32.mrb[12].mxu1 }
 0x6ad   :  { %v495_v16 = vadd.f32 %v489_v15, %v194_v49  ;;  %v732_v17 = vpop.f32.mrb[13].mxu1 }
 0x6ae   :  { %v492_v18 = vpop.f32.mrb[14].mxu1 }
 0x6af   :  { %775 = vtanh.f32 %v495_v16  ;;  %v733_v19 = vpop.f32.mrb[15].mxu1 }
 0x6b9   :  { %v776_v20 = vpop.eup %775 }
 0x6ba   :  { %v497_v21 = vpack.c.bf16 %v776_v20, %v776_v20 }
 0x6bc   :  { %739 = vmatmul.mubr.msk.bf16.vlgmr.msra.gmra.mrb[16].mxu0 %vm221_vm9, %v497_v21 }
 0x78f   :  { %v535_v24 = vpop.f32.mrb[16].mxu0 }
 0x790   :  { %v541_v25 = vadd.f32 %v896_v48, %v535_v24  ;;  %v740_v26 = vpop.f32.mrb[17].mxu0 }
 0x791   :  { %v538_v27 = vpop.f32.mrb[18].mxu0 }
 0x792   :  { %777 = vtanh.f32 %v541_v25  ;;  %v741_v28 = vpop.f32.mrb[19].mxu0 }
 0x79c   :  { %v778_v29 = vpop.eup %777 }
 0x79d   :  { %v543_v30 = vpack.c.bf16 %v778_v29, %v778_v29 }
 0x79f   :  { %747 = vmatmul.mubr.msk.bf16.vlgmr.msra.gmra.mrb[16].mxu1 %vm221_vm9, %v543_v30 }
 0x872   :  { %v604_v31 = vpop.f32.mrb[16].mxu1 }
 0x873   :  { %v605_v32 = vadd.f32 %v632_v7, %v604_v31  ;;  %v748_v33 = vpop.f32.mrb[17].mxu1 }
 0x874   :  { %v607_v34 = vpop.f32.mrb[18].mxu1 }
 0x875   :  { %610 = vst [vmem:[%s942_s5] sm:$0xff] %v605_v32  ;;  %v749_v35 = vpop.f32.mrb[19].mxu1 }

</bundles_post_ra>
